<compile_context>
chip_gen: v5e
topology: v5e:2x2
jax: 0.10.0
libtpu: 0.0.40
codegen_flags: <defaults>
</compile_context>

<pallas_src>
import jax
import jax.numpy as jnp
from jax.experimental import pallas as pl
from jax.experimental.pallas import tpu as pltpu

# ---- constants (ZoeDepth NYU metric range) ----------------------------------
MIN_DEPTH = 1e-3
MAX_DEPTH = 10.0
HIDDEN = 32
IMAGENET_MEAN = jnp.array([0.485, 0.456, 0.406], dtype=jnp.float32)
IMAGENET_STD = jnp.array([0.229, 0.224, 0.225], dtype=jnp.float32)


# ---- Pallas kernel -----------------------------------------------------------
def depthnet_kernel(x_ref, w1_ref, b1_ref, w2_ref, b2_ref, o_ref):
    # x_ref : (3, Tn) f32 tile of one image's flattened H*W pixels (batch dim
    #         squeezed by the BlockSpec -- NCHW consumed directly, no transpose).
    # w1_ref: (HIDDEN, 3) bf16 (ImageNet normalization folded in by wrapper).
    # b1_ref: (HIDDEN, 1) f32, w2_ref: (1, HIDDEN) bf16, b2_ref: (1, 1) f32.
    x = x_ref[...]

    # Layer 1 (3 -> HIDDEN) on the MXU: bf16 operands, f32 accumulation.
    h = jnp.dot(w1_ref[...], x.astype(jnp.bfloat16),
                preferred_element_type=jnp.float32)                 # (HIDDEN, Tn)
    h = jnp.maximum(h + b1_ref[...], 0.0)                            # f32 VPU

    # Layer 2 (HIDDEN -> 1) on the MXU as well.
    d = jnp.dot(w2_ref[...], h.astype(jnp.bfloat16),
                preferred_element_type=jnp.float32) + b2_ref[...]    # (1, Tn)

    # sigmoid via EUP exp + approx reciprocal (keeps the divide off the VPU),
    # then map into the ZoeDepth NYU metric range.
    p = pl.reciprocal(1.0 + jnp.exp(-d), approx=True)
    o_ref[...] = MIN_DEPTH + (MAX_DEPTH - MIN_DEPTH) * p


# ---- tiling / VMEM helpers ---------------------------------------------------
def _round_up(x, m):
    return ((x + m - 1) // m) * m


def _default_tile_target():
    """Generation-aware lane-tile target: 32K lanes on big-VMEM parts
    (v5e/v6e, 128 MiB), 16K on v7x-class parts (64 MiB physical)."""
    try:
        vmem = pltpu.get_tpu_info().vmem_capacity_bytes
    except Exception:
        vmem = 64 * 1024 * 1024  # conservative (v7x-sized) fallback
    return 32768 if vmem >= 96 * 1024 * 1024 else 16384


def _pick_tile_n(hw, batch, target):
    """Lane-tile size: the full H*W if it fits (full-dim blocks are always
    legal), else the largest multiple of 128 <= target (partial tail blocks
    are handled by the cdiv grid).  When batch == 1, force >= 2 grid steps on
    the pixel axis so both v7x TensorCores get work."""
    if hw <= target:
        tile = hw
    else:
        tile = (target // 128) * 128
    if batch == 1 and tile >= hw and hw >= 256:
        tile = min(_round_up(pl.cdiv(hw, 2), 128), (hw // 128) * 128)
        tile = max(tile, 128)
    return tile


def _vmem_limit_bytes(tile_n):
    """Padding-aware per-step VMEM model (bytes), with headroom."""
    per_step = tile_n * (
        2 * 8 * 4      # input  (3 -> 8 sublanes, Tn) f32, double-buffered
        + 2 * 8 * 4    # output (1 -> 8 sublanes, Tn) f32, double-buffered
        + 16 * 2       # x bf16 copy (3 -> 16 packed sublanes, Tn)
        + HIDDEN * 4   # h f32 intermediate
        + HIDDEN * 2   # h bf16 copy for the MXU
        + 2 * 8 * 4    # d / depth (1 -> 8 sublanes, Tn) f32 temporaries
    )
    # 2x headroom for compiler temporaries; 16 MiB floor; 32 MiB cap is safe
    # on v7x's 64 MiB physical VMEM and trivially so on v5e/v6e's 128 MiB.
    return int(min(max(2 * per_step, 16 * 1024 * 1024), 32 * 1024 * 1024))


# ---- wrapper -----------------------------------------------------------------
def depthnet_forward(rgb_nchw, params, *, tile_n=None, do_normalize=True):
    """rgb_nchw: (B, 3, H, W) float32 (bf16 also accepted).
    Returns metric depth (B, 1, H, W) float32."""
    B, C, H, W = rgb_nchw.shape
    assert C == 3
    HW = H * W
    if tile_n is None:
        tile_n = _pick_tile_n(HW, B, _default_tile_target())
    assert tile_n == HW or tile_n % 128 == 0, "tile_n must be full H*W or a multiple of 128"

    # NCHW -> (B, 3, H*W): pure metadata reshape, no extra HBM traffic.
    x = rgb_nchw.reshape(B, C, HW)

    w1 = params["w1"].astype(jnp.float32)   # (HIDDEN, 3)
    b1 = params["b1"].astype(jnp.float32)   # (HIDDEN, 1)
    w2 = params["w2"].astype(jnp.float32)   # (1, HIDDEN)
    b2 = params["b2"].astype(jnp.float32)   # (1, 1)

    if do_normalize:
        # Exact affine fold of transforms.Normalize into layer 1:
        #   w1 @ ((x - mean) * inv_std) + b1
        #     = (w1 * inv_std^T) @ x + (b1 - (w1 * inv_std^T) @ mean)
        inv_std = (1.0 / params["std"]).astype(jnp.float32)
        w1_eff = w1 * inv_std.reshape(1, C)
        b1_eff = b1 - jnp.dot(w1_eff, params["mean"].astype(jnp.float32).reshape(C, 1))
    else:
        w1_eff, b1_eff = w1, b1

    # Pre-cast weights to bf16 once in the wrapper (no per-step astype of
    # weights inside the kernel); biases stay f32.
    w1_bf = w1_eff.astype(jnp.bfloat16)
    w2_bf = w2.astype(jnp.bfloat16)

    grid_n = pl.cdiv(HW, tile_n)        # partial tail block allowed (masked)
    grid = (B, grid_n)

    out = pl.pallas_call(
        depthnet_kernel,
        out_shape=jax.ShapeDtypeStruct((B, 1, HW), jnp.float32),
        grid_spec=pltpu.PrefetchScalarGridSpec(
            num_scalar_prefetch=0,
            grid=grid,
            in_specs=[
                # x tile: batch dim squeezed, channels on sublanes, pixels on lanes.
                pl.BlockSpec((None, C, tile_n), lambda b, i: (b, 0, i)),
                pl.BlockSpec((HIDDEN, C), lambda b, i: (0, 0)),   # w1 (folded, bf16)
                pl.BlockSpec((HIDDEN, 1), lambda b, i: (0, 0)),   # b1 (folded, f32)
                pl.BlockSpec((1, HIDDEN), lambda b, i: (0, 0)),   # w2 (bf16)
                pl.BlockSpec((1, 1), lambda b, i: (0, 0)),        # b2 (f32)
            ],
            out_specs=pl.BlockSpec((None, 1, tile_n), lambda b, i: (b, 0, i)),
        ),
        compiler_params=pltpu.CompilerParams(
            dimension_semantics=("parallel", "parallel"),
            vmem_limit_bytes=_vmem_limit_bytes(tile_n)),
    )(x, w1_bf, b1_eff, w2_bf, b2)

    # (B, 1, H*W) -> (B, 1, H, W): pure metadata reshape.
    return out.reshape(B, 1, H, W)


# ---- pure-JAX reference (f32) for correctness check --------------------------
def depthnet_reference(rgb_nchw, params, *, do_normalize=True):
    x = rgb_nchw.astype(jnp.float32)
    if do_normalize:
        mean = params["mean"].reshape(1, 3, 1, 1)
        std = params["std"].reshape(1, 3, 1, 1)
        x = (x - mean) / std
    B, C, H, W = x.shape
    xf = x.reshape(B, C, H * W)
    h = jnp.maximum(jnp.einsum("hc,bcn->bhn", params["w1"], xf)
                    + params["b1"][None], 0.0)
    d = jnp.einsum("oh,bhn->bon", params["w2"], h) + params["b2"][None]
    depth = MIN_DEPTH + (MAX_DEPTH - MIN_DEPTH) * jax.nn.sigmoid(d)
    return depth.reshape(B, 1, H, W)


def init_params():
    """Deterministic synthetic parameters for the stand-in depth head."""
    k = jax.random.PRNGKey(42)
    k1, k2 = jax.random.split(k)
    w1 = (jax.random.normal(k1, (HIDDEN, 3), dtype=jnp.float32)
          * (1.0 / jnp.sqrt(3.0)))
    b1 = jnp.zeros((HIDDEN, 1), dtype=jnp.float32)
    w2 = (jax.random.normal(k2, (1, HIDDEN), dtype=jnp.float32)
          * (1.0 / jnp.sqrt(float(HIDDEN))))
    b2 = jnp.zeros((1, 1), dtype=jnp.float32)
    return {
        "mean": IMAGENET_MEAN,
        "std": IMAGENET_STD,
        "w1": w1, "b1": b1, "w2": w2, "b2": b2,
    }


if __name__ == "__main__":
    B, C, H, W = 2, 3, 16, 16          # small RGB batch, NCHW like PyTorch
    key = jax.random.PRNGKey(0)
    rgb = jax.random.uniform(key, (B, C, H, W), dtype=jnp.float32)  # in [0, 1)

    params = init_params()
    depth = depthnet_forward(rgb, params, do_normalize=True)
    depth = jax.block_until_ready(depth)

    assert depth.shape == (B, 1, H, W)
    assert bool(jnp.all(depth >= MIN_DEPTH)) and bool(jnp.all(depth <= MAX_DEPTH))
    assert bool(jnp.all(jnp.isfinite(depth)))

    # Loose tolerance: kernel uses bf16 MXU operands + approx reciprocal.
    ref = depthnet_reference(rgb, params, do_normalize=True)
    max_err = float(jnp.max(jnp.abs(depth - ref)))
    assert max_err < 0.2, f"max abs err vs f32 reference: {max_err}"

    print("KERNEL_OK")
</pallas_src>

<mosaic_0001>
module attributes {stable_mosaic.version = 11 : i64} {
  func.func @depthnet_kernel(%arg0: i32, %arg1: i32, %arg2: memref<1x3x256xf32, #tpu.memory_space<vmem>>, %arg3: memref<32x3xbf16, #tpu.memory_space<vmem>>, %arg4: memref<32x1xf32, #tpu.memory_space<vmem>>, %arg5: memref<1x32xbf16, #tpu.memory_space<vmem>>, %arg6: memref<1x1xf32, #tpu.memory_space<vmem>>, %arg7: memref<1x1x256xf32, #tpu.memory_space<vmem>>) attributes {dimension_semantics = [#tpu.dimension_semantics<parallel>, #tpu.dimension_semantics<parallel>], iteration_bounds = array<i64: 2, 1>, scalar_prefetch = 0 : i64, scratch_operands = 0 : i64, tpu.core_type = #tpu.core_type<tc>, window_params = [{transform_indices = @transform_0, window_bounds = array<i64: 1, 3, 256>}, {pipeline_mode = #tpu.pipeline_mode<synchronous>, transform_indices = @transform_1, window_bounds = array<i64: 32, 3>}, {pipeline_mode = #tpu.pipeline_mode<synchronous>, transform_indices = @transform_2, window_bounds = array<i64: 32, 1>}, {pipeline_mode = #tpu.pipeline_mode<synchronous>, transform_indices = @transform_3, window_bounds = array<i64: 1, 32>}, {pipeline_mode = #tpu.pipeline_mode<synchronous>, transform_indices = @transform_4, window_bounds = array<i64: 1, 1>}, {transform_indices = @transform_5, window_bounds = array<i64: 1, 1, 256>}]} {
    %c0 = arith.constant 0 : index
    %c0_0 = arith.constant 0 : index
    %c0_1 = arith.constant 0 : index
    %0 = vector.load %arg2[%c0, %c0_0, %c0_1] : memref<1x3x256xf32, #tpu.memory_space<vmem>>, vector<1x3x256xf32>
    %1 = vector.shape_cast %0 : vector<1x3x256xf32> to vector<3x256xf32>
    %c0_2 = arith.constant 0 : index
    %c0_3 = arith.constant 0 : index
    %2 = vector.load %arg3[%c0_2, %c0_3] : memref<32x3xbf16, #tpu.memory_space<vmem>>, vector<32x3xbf16>
    %3 = arith.truncf %1 : vector<3x256xf32> to vector<3x256xbf16>
    %cst = arith.constant dense<0.000000e+00> : vector<32x256xf32>
    %4 = tpu.matmul %2, %3, %cst {dimension_numbers = #tpu.dot_dimension_numbers<[1], [0], [0], [1], [0, 0, 1, 1], [], []>} : vector<32x3xbf16>, vector<3x256xbf16>, vector<32x256xf32> -> vector<32x256xf32>
    %c0_4 = arith.constant 0 : index
    %c0_5 = arith.constant 0 : index
    %5 = vector.load %arg4[%c0_4, %c0_5] : memref<32x1xf32, #tpu.memory_space<vmem>>, vector<32x1xf32>
    %6 = vector.broadcast %5 : vector<32x1xf32> to vector<32x256xf32>
    %7 = arith.addf %4, %6 : vector<32x256xf32>
    %cst_6 = arith.constant 0.000000e+00 : f32
    %8 = vector.broadcast %cst_6 : f32 to vector<32x256xf32>
    %9 = arith.maximumf %7, %8 : vector<32x256xf32>
    %c0_7 = arith.constant 0 : index
    %c0_8 = arith.constant 0 : index
    %10 = vector.load %arg5[%c0_7, %c0_8] : memref<1x32xbf16, #tpu.memory_space<vmem>>, vector<1x32xbf16>
    %11 = arith.truncf %9 : vector<32x256xf32> to vector<32x256xbf16>
    %cst_9 = arith.constant dense<0.000000e+00> : vector<1x256xf32>
    %12 = tpu.matmul %10, %11, %cst_9 {dimension_numbers = #tpu.dot_dimension_numbers<[1], [0], [0], [1], [0, 0, 1, 1], [], []>} : vector<1x32xbf16>, vector<32x256xbf16>, vector<1x256xf32> -> vector<1x256xf32>
    %c0_10 = arith.constant 0 : index
    %c0_11 = arith.constant 0 : index
    %13 = vector.load %arg6[%c0_10, %c0_11] : memref<1x1xf32, #tpu.memory_space<vmem>>, vector<1x1xf32>
    %14 = vector.broadcast %13 : vector<1x1xf32> to vector<1x256xf32>
    %15 = arith.addf %12, %14 : vector<1x256xf32>
    %cst_12 = arith.constant 0.000000e+00 : f32
    %16 = vector.broadcast %cst_12 : f32 to vector<1x256xf32>
    %17 = arith.subf %16, %15 : vector<1x256xf32>
    %18 = math.exp %17 : vector<1x256xf32>
    %cst_13 = arith.constant 1.000000e+00 : f32
    %19 = vector.broadcast %cst_13 : f32 to vector<1x256xf32>
    %20 = arith.addf %19, %18 : vector<1x256xf32>
    %21 = tpu.reciprocal %20 {approx = true} : vector<1x256xf32> -> vector<1x256xf32>
    %cst_14 = arith.constant 9.99899959 : f32
    %22 = vector.broadcast %cst_14 : f32 to vector<1x256xf32>
    %23 = arith.mulf %22, %21 : vector<1x256xf32>
    %cst_15 = arith.constant 1.000000e-03 : f32
    %24 = vector.broadcast %cst_15 : f32 to vector<1x256xf32>
    %25 = arith.addf %24, %23 : vector<1x256xf32>
    %c0_16 = arith.constant 0 : index
    %c0_17 = arith.constant 0 : index
    %c0_18 = arith.constant 0 : index
    %26 = vector.load %arg7[%c0_16, %c0_17, %c0_18] : memref<1x1x256xf32, #tpu.memory_space<vmem>>, vector<1x1x256xf32>
    %27 = vector.shape_cast %26 : vector<1x1x256xf32> to vector<1x256xf32>
    %28 = vector.shape_cast %25 : vector<1x256xf32> to vector<1x1x256xf32>
    tpu.vector_store %arg7[%c0_16, %c0_17, %c0_18], %28 {strides = array<i32>} : memref<1x1x256xf32, #tpu.memory_space<vmem>>, vector<1x1x256xf32>,
    return
  }
  func.func @transform_0(%arg0: i32, %arg1: i32) -> (i32, i32, i32) {
    %c0_i32 = arith.constant 0 : i32
    %c0_i32_0 = arith.constant 0 : i32
    return %arg0, %c0_i32, %arg1 : i32, i32, i32
  }
  func.func @transform_1(%arg0: i32, %arg1: i32) -> (i32, i32) {
    %c0_i32 = arith.constant 0 : i32
    %c0_i32_0 = arith.constant 0 : i32
    %c0_i32_1 = arith.constant 0 : i32
    return %c0_i32, %c0_i32_0 : i32, i32
  }
  func.func @transform_2(%arg0: i32, %arg1: i32) -> (i32, i32) {
    %c0_i32 = arith.constant 0 : i32
    %c0_i32_0 = arith.constant 0 : i32
    %c0_i32_1 = arith.constant 0 : i32
    return %c0_i32, %c0_i32_0 : i32, i32
  }
  func.func @transform_3(%arg0: i32, %arg1: i32) -> (i32, i32) {
    %c0_i32 = arith.constant 0 : i32
    %c0_i32_0 = arith.constant 0 : i32
    %c0_i32_1 = arith.constant 0 : i32
    return %c0_i32, %c0_i32_0 : i32, i32
  }
  func.func @transform_4(%arg0: i32, %arg1: i32) -> (i32, i32) {
    %c0_i32 = arith.constant 0 : i32
    %c0_i32_0 = arith.constant 0 : i32
    %c0_i32_1 = arith.constant 0 : i32
    return %c0_i32, %c0_i32_0 : i32, i32
  }
  func.func @transform_5(%arg0: i32, %arg1: i32) -> (i32, i32, i32) {
    %c0_i32 = arith.constant 0 : i32
    %c0_i32_0 = arith.constant 0 : i32
    return %arg0, %c0_i32, %arg1 : i32, i32, i32
  }
}

</mosaic_0001>

<bundles_post_ra>
// kernel: tpu_custom_call.1
= control target key start
LH: loop header
LB: loop body
LE: loop exit
PB: predicated region body
PF: predicated region fallthrough
CT: control target
= control target key end

     0   :  { %s858_s0 = inlined_call_operand.vmem [shape: f32[2,3,256], index: 0, kind: input, shape index: {}]   ;;  %s859_s1 = inlined_call_operand.vmem [shape: bf16[32,3], index: 1, kind: input, shape index: {}]   ;;  %s860_s2 = inlined_call_operand.vmem [shape: f32[32,1], index: 2, kind: input, shape index: {}]   ;;  %s861_s3 = inlined_call_operand.vmem [shape: bf16[1,32], index: 3, kind: input, shape index: {}]   ;;  %s862_s4 = inlined_call_operand.<no memory space> [shape: f32[1,1], index: 4, kind: input, shape index: {}]   ;;  %s863_s5 = inlined_call_operand.hbm [shape: f32[2,1,256], index: 5, kind: output, shape index: {}]  }
   0x1   :  { %v10_v0 = vstv %s862_s4 }
   0x2   :  { %11 = vst [vmem:[#allocation2] sm:$0x1] %v10_v0 }
   0x3   :  { %12 = vsyncpa [#allocation4], 0 }
   0x4   :  { %14 = vsyncpa [#allocation4 + $0x1], 0  ;;  %s738_s20 = smov 0   ;;  %s740_s21 = smov 0  }
   0x5   :  { %s742_s22 = smov 0   ;;  %s744_s23 = smov 0  }
   0x6   :  { %s746_s24 = smov 0   ;;  %s748_s25 = smov 0  }
   0x7 LB: > { %s526_s4 = sadd.s32 4294967295, %s701_s25   ;;  %s527_s26 = sadd.s32 4294967294, %s701_s25   ;;  %s701_s25 = sphi %s748_s25, %s20_s25   ;;  %s697_s24 = sphi %s746_s24, %s870_s24   ;;  %s693_s23 = sphi %s744_s23, %s869_s23   ;;  %s689_s22 = sphi %s742_s22, %s868_s22   ;;  %s685_s21 = sphi %s740_s21, %s867_s21   ;;  %s681_s20 = sphi %s738_s20, %s866_s20  }
   0x8   : > { %s32_s27 = sadd.s32 1, %s697_s24  ;;  %s153_s28 = sadd.s32 1, %s689_s22 }
   0x9   : > { %p34_p0 = scmp.ge.s32.totalorder %s32_s27, 2  ;;  %p163_p1 = scmp.ne.s32.totalorder %s689_s22, %s685_s21 }
   0xa   : > { %p164_p2 = scmp.eq.s32.totalorder %s526_s4, 1  ;;  %p169_p3 = scmp.ne.s32.totalorder %s685_s21, %s681_s20 }
   0xb   : > { %s872_s27 = smov (%p34_p0, %s32_s27), 0  ;;  %p170_p5 = scmp.eq.s32.totalorder %s527_s26, 1 }
   0xc   : > { %p778_p4 = por %p164_p2, %p163_p1  ;;  %s148_s30 = ssub.s32 %s697_s24, %s872_s27 }
   0xd   : > { %p530_p6 = scmp.ge.s32.totalorder %s701_s25, 1  ;;  %p151_p7 = scmp.eq.s32.totalorder %s148_s30, 0 }
   0xe   : > { %p785_p8 = por %p170_p5, %p169_p3  ;;  %p213_p9 = scmp.lt.s32.totalorder %s701_s25, 3 }
   0xf   : > { %s791_s7 = scalar_select %p151_p7, %s689_s22, %s153_s28  }
  0x10   : > { %p214_p10 = pnand %p530_p6, %p213_p9 }
  0x11   : > { %p246_p11 = scmp.lt.s32.totalorder (!%p214_p10), %s693_s23, 1  ;;  %s549_s13 = sshll.u32 (!%p214_p10), %s693_s23, 1 }
  0x12   : > { %217 = sbr.rel (%p214_p10) target bundleno = 371 (0x173), region = 40  ;;  %s446_s16 = scalar_lea.hbm (!%p214_p10), %s863_s5, %s549_s13 }
  0x13   : > { %s450_s19 = sshll.u32 (!%p214_p10), %s446_s16, 4  ;;  %s643_s8 = scalar_lea.hbm (!%p214_p10), %s863_s5, 4  ;;  %s451_s19 = int_to_ptr.hbm [resolvable:$true] %s450_s19 }
  0x14   : > { %s637_s4 = sshra.s32 (!%p214_p10), %s451_s19, 4  ;;  %s638_s4 = int_to_ptr.hbm [resolvable:$true] %s637_s4 }
  0x15   : > { %s639_s26 = scalar_lea.hbm (!%p214_p10), %s638_s4, 2  ;;  %p644_p1 = scmp.lt.s32.totalorder (!%p214_p10), %s638_s4, %s863_s5 }
  0x16   : > { %p640_p12 = scmp.ne.s32.totalorder (!%p214_p10), %s638_s4, %s639_s26  ;;  %p645_p2 = scmp.lt.s32.totalorder (!%p214_p10), %s643_s8, %s639_s26 }
  0x17   : > { %v270_v1 = vld [vmem:[%s860_s2] sm:$0xff]  ;;  %s247_s10 = scalar_select %p246_p11, %s693_s23, 1  ;;  %v703_v2 = vmov 0   ;;  %v272_v4 = vld [vmem:[%s860_s2 + $0x10] sm:$0xff]  ;;  %vm311_vm0 = vcmask 1040384   ;;  %v271_v5 = vld [vmem:[%s860_s2 + $0x8] sm:$0xff] }
  0x18   : > { %613 = vset.pattern.permute.xlu1 %v703_v2  ;;  %612 = vset.pattern.permute.xlu0 %v703_v2  ;;  %vm312_vm1 = vcmask 1041408   ;;  %v704_v6 = vmov 65535   ;;  %v273_v8 = vld [vmem:[%s860_s2 + $0x18] sm:$0xff]  ;;  %v553_v16 = vld [vmem:[%s859_s1] sm:$0xff]  ;;  %vm304_vm2 = vcmask 23552   ;;  %v554_v17 = vld [vmem:[%s859_s1 + $0x8] sm:$0xff]  ;;  %p641_p13 = pnand %p640_p12, %p778_p4  ;;  %p646_p3 = por %p645_p2, %p644_p1 }
  0x19   : > { %276 = vperm.xlu1 %613, %v270_v1   ;;  %614 = vset.pattern.permute.xlu2 %v703_v2  ;;  %s552_s11 = sshll.u32 %s247_s10, 3  ;;  %v313_v7 = vsel %vm311_vm0, 4294967295, %v704_v6  ;;  %v372_v20 = vld [vmem:[#allocation2] sm:$0x1]  ;;  %v367_v51 = vld [vmem:[%s861_s3] sm:$0x1] }
  0x1a   : > { %s253_s14 = scalar_lea.vmem %s858_s0, %s552_s11  ;;  %286 = vperm.xlu0 %612, %v272_v4   ;;  %v314_v9 = vsel %vm312_vm1, %v313_v7, 0  ;;  %375 = vperm.xlu2 %614, %v372_v20   ;;  %vm379_vm3 = vcmask 261120   ;;  %s242_s11 = sand.u32 1, %s685_s21  }
  0x1b   : > { %v257_v3 = vld [vmem:[%s253_s14] sm:$0x77]  ;;  %s531_s12 = sshll.u32 %s242_s11, 1  ;;  %s434_s23 = scalar_lea.sflag [#allocation4], %s242_s11 }
  0x1c   : > { %263 = vst [vmem:[#allocation1] ss:$2 sm:$0xff] %v257_v3  ;;  %s244_s17 = scalar_lea.vmem [#allocation3], %s531_s12  ;;  %p642_p0 = pneg %p641_p13 }
  0x1d   : > { %s448_s18 = sshll.u32 %s244_s17, 4  ;;  %s449_s18 = int_to_ptr.vmem [resolvable:$true] %s448_s18 }
  0x1e   : > { %p647_p5 = pnand %p646_p3, %p642_p0 }
  0x21   : > { %281 = vperm.xlu1 %613, %v271_v5  }
  0x22   : > { %291 = vperm.xlu0 %612, %v273_v8   ;;  %v428_v8 = vlaneseq }
  0x23   : > { %v264_v10 = vld.sshfl [vmem:[#allocation1] sm:$0xff pattern:$0x75316420]  ;;  %v265_v11 = vld.sshfl [vmem:[#allocation1 + $0x8] sm:$0xff pattern:$0x75316420] }
  0x24   : > { %v268_v12 = vpack.c.bf16 %v264_v10, %v264_v10  ;;  %v269_v13 = vpack.c.bf16 %v265_v11, %v265_v11  ;;  %vm430_vm4 = vcmp.lt.s32.totalorder %v428_v8, 256 }
  0x26   : > { %v316_v14 = vand.u32 %v314_v9, %v268_v12  ;;  %v319_v15 = vand.u32 %v314_v9, %v269_v13 }
  0x28   : > { %328 = vmatpush.bf16.msra.mxu0 %v316_v14  ;;  %347 = vmatpush.bf16.msra.mxu1 %v319_v15 }
  0x2b   : > { %542 = vmatmul.msk.bf16.vlgmr.msra.gmra.mxu0 %vm304_vm2, %v553_v16  ;;  %544 = vmatmul.msk.bf16.vlgmr.msra.gmra.mxu1 %vm304_vm2, %v553_v16 }
  0x3b   : > { %543 = vmatmul.msk.bf16.gmra.mxu0 %vm304_vm2, %v554_v17  ;;  %545 = vmatmul.msk.bf16.gmra.mxu1 %vm304_vm2, %v554_v17 }
  0x74   : > { %v376_v52 = vpop.permute.xlu2 %375 }
  0x75   : > { %v378_v53 = vperm.slane %v376_v52, 0 }
  0x8b   : > { %v277_v23 = vpop.permute.xlu1 %276 }
  0x8c   : > { %v287_v24 = vpop.permute.xlu0 %286 }
  0x93   : > { %v282_v27 = vpop.permute.xlu1 %281 }
  0x94   : > { %v292_v28 = vpop.permute.xlu0 %291 }
  0xa8   : > { %v330_v18 = vpop.f32.mrf.mxu0  ;;  %v349_v19 = vpop.f32.mrf.mxu1 }
  0xa9   : > { %v331_v37 = vadd.f32 %v330_v18, %v277_v23  ;;  %v350_v38 = vadd.f32 %v349_v19, %v277_v23 }
  0xab   : > { %v359_v47 = vmax.f32 %v331_v37, 0.0  ;;  %v360_v48 = vmax.f32 %v350_v38, 0.0 }
  0xb0   : > { %v332_v21 = vpop.f32.mrf.mxu0  ;;  %v351_v22 = vpop.f32.mrf.mxu1 }
  0xb1   : > { %v333_v33 = vadd.f32 %v332_v21, %v282_v27  ;;  %v352_v34 = vadd.f32 %v351_v22, %v282_v27 }
  0xb3   : > { %v361_v43 = vmax.f32 %v333_v33, 0.0  ;;  %v362_v44 = vmax.f32 %v352_v34, 0.0 }
  0xb5   : > { %v368_v49 = vpack.c.bf16 %v361_v43, %v359_v47  ;;  %v369_v50 = vpack.c.bf16 %v362_v44, %v360_v48 }
  0xb8   : > { %v335_v25 = vpop.f32.mrf.mxu0  ;;  %v354_v26 = vpop.f32.mrf.mxu1 }
  0xb9   : > { %v336_v29 = vadd.f32 %v335_v25, %v287_v24  ;;  %v355_v30 = vadd.f32 %v354_v26, %v287_v24 }
  0xbb   : > { %v363_v39 = vmax.f32 %v336_v29, 0.0  ;;  %v364_v40 = vmax.f32 %v355_v30, 0.0 }
  0xc0   : > { %v337_v31 = vpop.f32.mrf.mxu0  ;;  %v356_v32 = vpop.f32.mrf.mxu1 }
  0xc1   : > { %v338_v35 = vadd.f32 %v337_v31, %v292_v28  ;;  %v357_v36 = vadd.f32 %v356_v32, %v292_v28 }
  0xc3   : > { %v365_v41 = vmax.f32 %v338_v35, 0.0  ;;  %v366_v42 = vmax.f32 %v357_v36, 0.0 }
  0xc5   : > { %v370_v45 = vpack.c.bf16 %v365_v41, %v363_v39  ;;  %v371_v46 = vpack.c.bf16 %v366_v42, %v364_v40 }
  0xc7   : > { %389 = vmatpush.bf16.msra.mxu2 %v370_v45  ;;  %402 = vmatpush.bf16.msra.mxu3 %v371_v46 }
  0xcb   : > { %390 = vmatpush.bf16.msra.mxu2 %v368_v49  ;;  %403 = vmatpush.bf16.msra.mxu3 %v369_v50 }
  0xce   : > { %546 = vmatmul.msk.bf16.vlgmr.msra.gmra.mxu2 %vm379_vm3, %v367_v51  ;;  %547 = vmatmul.msk.bf16.vlgmr.msra.gmra.mxu3 %vm379_vm3, %v367_v51 }
 0x151   : > { %v392_v54 = vpop.f32.mrf.mxu2  ;;  %v405_v55 = vpop.f32.mrf.mxu3 }
 0x152   : > { %v393_v56 = vadd.f32 %v392_v54, %v378_v53  ;;  %v406_v57 = vadd.f32 %v405_v55, %v378_v53 }
 0x154   : > { %v409_v58 = vsub.f32 0.0, %v393_v56  ;;  %v410_v59 = vsub.f32 0.0, %v406_v57 }
 0x156   : > { %v411_v60 = vmul.f32 1.442695, %v409_v58  ;;  %v413_v61 = vmul.f32 1.442695, %v410_v59 }
 0x158   : > { %615 = vpow2.f32 %v411_v60 }
 0x159   : > { %617 = vpow2.f32 %v413_v61  ;;  %v394_v62 = vpop.f32.mrf.mxu2  ;;  %v407_v63 = vpop.f32.mrf.mxu3 }
 0x15e   : > { %v616_v0 = vpop.eup %615 }
 0x15f   : > { %v618_v1 = vpop.eup %617  ;;  %v415_v2 = vadd.f32 1.0, %v616_v0 }
 0x160   : > { %v416_v3 = vadd.f32 1.0, %v618_v1 }
 0x161   : > { %619 = vrcp.f32 %v415_v2 }
 0x162   : > { %621 = vrcp.f32 %v416_v3 }
 0x167   : > { %v620_v4 = vpop.eup %619 }
 0x168   : > { %v622_v5 = vpop.eup %621  ;;  %v419_v6 = vmul.f32 9.999, %v620_v4 }
 0x169   : > { %v420_v7 = vmul.f32 9.999, %v622_v5 }
 0x16a   : > { %v421_v10 = vadd.f32 0.001, %v419_v6 }
 0x16b   : > { %v422_v9 = vadd.f32 0.001, %v420_v7 }
 0x16d   : > { %v425_v11 = vrot.slane %v422_v9, 7 }
 0x16f   : > { %v426_v12 = vsel %vm311_vm0, %v421_v10, %v425_v11 }
 0x170   : > { %432 = vst.msk [vmem:[%s244_s17] sm:$0x3] %vm430_vm4, %v426_v12 }
 0x171   : > { %650 = shalt.err (!%p647_p5)
}
 0x172   : > { %555 = dma.vmem_to_hbm [thread:$0]  (%p778_p4), %s449_s18, 32, %s451_s19, %s434_s23  }
 0x173 PF: > { %p561_p6 = scmp.ge.s32.totalorder %s701_s25, 2  ;;  %s462_s11 = sand.u32 1, %s681_s20  }
 0x174   : > { %s463_s12 = scalar_lea.sflag [#allocation4], %s462_s11 }
 0x175   : > { %p558_p7 = pnand %p561_p6, %p785_p8 }
 0x177   : > { %p559_p9 = pneg %p558_p7 }
 0x179   : > { %676 = dma.done.wait (%p559_p9), %s463_s12, 32  }
 0x17a   : > { %678 = vsyncadd (%p559_p9), %s463_s12, 4294967264  ;;  %s20_s25 = sadd.s32 1, %s701_s25   ;;  %s866_s20 = smov %s685_s21 }
 0x17b   : > { %p17_p10 = scmp.ge.s32.totalorder %s20_s25, 4   ;;  %s867_s21 = smov %s689_s22 }
 0x17c   : > { %s868_s22 = smov %s791_s7  ;;  %s869_s23 = smov %s697_s24 }
 0x17d   : > { %s870_s24 = smov %s872_s27  ;;  %19 = sbr.rel (!%p17_p10) target bundleno = 7 (0x7), region = 75 }
 0x182   :  { %469 = vsyncpa [#allocation4], 1 }
 0x183   :  { %471 = vsyncpa [#allocation4 + $0x1], 1 }

</bundles_post_ra>
